<compile_context>
chip_gen: v7x
topology: tpu7x:2x2x1
jax: 0.10.0
libtpu: 0.0.40
codegen_flags: <defaults>
</compile_context>

<pallas_src>
import functools

import jax
import jax.numpy as jnp
from jax.experimental import pallas as pl
from jax.experimental.pallas import tpu as pltpu

LN_EPS = 1e-5   # PyTorch nn.LayerNorm default eps
LANE = 128      # lane width (last-dim quantum)
SUB = 8         # sublane quantum for f32


def _round_up(x, m):
    return ((x + m - 1) // m) * m


# ---------------------------------------------------------------------------
# Fused kernel: [Linear -> ReLU -> LN(normalize only)] x n_layers -> Linear
# All parameters live in one packed (rows, 128) VMEM buffer; `meta` holds the
# static (w_off, din_pad, b_off) row offsets per layer, `douts` the REAL
# (unpadded) output widths used for the LayerNorm statistics.
# ---------------------------------------------------------------------------
def make_decoder_kernel(meta, douts, n_layers):
    def kernel(x_ref, p_ref, o_ref):
        h = x_ref[...]
        for i in range(n_layers + 1):                       # unrolled at trace time
            w_off, din_pad, b_off = meta[i]
            w = p_ref[w_off:w_off + din_pad, :]             # static, tile-aligned view
            b = p_ref[b_off:b_off + 1, :]
            h = jnp.dot(h, w, preferred_element_type=jnp.float32) + b
            if i < n_layers:
                h = jnp.maximum(h, 0.0)                     # ReLU
                # LayerNorm over the REAL feature width (padded lanes are zero
                # here, so they add 0 to the sums); affine already folded into
                # the next layer's weights.
                inv_d = 1.0 / float(douts[i])
                mean = jnp.sum(h, axis=-1, keepdims=True) * inv_d
                msq = jnp.sum(h * h, axis=-1, keepdims=True) * inv_d
                var = jnp.maximum(msq - mean * mean, 0.0)   # clamp: no rsqrt NaN
                h = (h - mean) * jax.lax.rsqrt(var + LN_EPS)
        # Projection result; symmetrization pre-folded into wp/bp, padded lanes
        # of the projection are zero -> lane-dense (B_pad, 128) full-vreg store.
        o_ref[...] = h

    return kernel


def decoder_forward(x, packed, *, meta, douts, lane_w, latent_pad, n_nodes):
    n_layers = len(douts) - 1
    B = x.shape[0]
    B_pad = _round_up(max(B, SUB), SUB)

    # Pad batch to the sublane quantum and latent to the padded lane width.
    x_p = jnp.zeros((B_pad, latent_pad), jnp.float32).at[:B, :x.shape[1]].set(x)

    flops = 2 * B_pad * sum(m[1] * lane_w for m in meta)
    bytes_accessed = 4 * (x_p.size + packed.size + B_pad * lane_w)
    ce = pl.CostEstimate(flops=flops,
                         transcendentals=n_layers * B_pad,
                         bytes_accessed=bytes_accessed)

    vmem = pl.BlockSpec(memory_space=pltpu.MemorySpace.VMEM)
    y = pl.pallas_call(
        make_decoder_kernel(meta, douts, n_layers),
        out_shape=jax.ShapeDtypeStruct((B_pad, lane_w), jnp.float32),
        in_specs=[vmem, vmem],
        out_specs=vmem,
        cost_estimate=ce,
    )(x_p, packed)

    # Drop batch/lane padding, reshape (metadata only); already symmetric.
    return y[:B, :n_nodes * n_nodes].reshape(B, n_nodes, n_nodes)


# ---------------------------------------------------------------------------
# Parameter construction (deterministic, synthetic)
# ---------------------------------------------------------------------------
def init_params(key, latent_dim, hidden_dim, n_layers, n_nodes):
    dims = [latent_dim] + [hidden_dim * (i + 1) for i in range(n_layers)]
    params = {"fc": []}
    for i in range(n_layers):
        key, k_w, k_b, k_g, k_be = jax.random.split(key, 5)
        din, dout = dims[i], dims[i + 1]
        w = jax.random.normal(k_w, (din, dout), jnp.float32) / jnp.sqrt(float(din))
        b = jax.random.normal(k_b, (1, dout), jnp.float32) * 0.01
        # Non-trivial LN affine so the fold is actually exercised.
        gamma = 1.0 + 0.1 * jax.random.normal(k_g, (1, dout), jnp.float32)
        beta = 0.1 * jax.random.normal(k_be, (1, dout), jnp.float32)
        params["fc"].append((w, b, gamma, beta))
    key, k_w, k_b = jax.random.split(key, 3)
    dp_in, dp_out = hidden_dim * n_layers, n_nodes * n_nodes
    wp = jax.random.normal(k_w, (dp_in, dp_out), jnp.float32) / jnp.sqrt(float(dp_in))
    bp = jax.random.normal(k_b, (1, dp_out), jnp.float32) * 0.01
    params["proj"] = (wp, bp)
    return params


# ---------------------------------------------------------------------------
# Host-side folding + packing into ONE tile-aligned parameter buffer.
#   - LN affine folded into the next Linear (last LN into the projection).
#   - (adj + adj^T)/2 folded into the projection columns.
#   - Every segment zero-padded to (mult-of-8 rows, lane_w lanes) and stacked.
# ---------------------------------------------------------------------------
def fold_and_pack_params(params, latent_dim, n_nodes):
    fcs = params["fc"]
    n_layers = len(fcs)

    ws, bs = [fcs[0][0]], [fcs[0][1]]          # layer 0: no preceding LN
    for i in range(1, n_layers):
        w, b, _, _ = fcs[i]
        g_prev, be_prev = fcs[i - 1][2], fcs[i - 1][3]
        ws.append(g_prev.reshape(-1, 1) * w)   # diag(gamma_prev) @ W
        bs.append(be_prev @ w + b)             # beta_prev @ W + b

    wp, bp = params["proj"]
    g_last, be_last = fcs[-1][2], fcs[-1][3]
    wp_f = g_last.reshape(-1, 1) * wp
    bp_f = be_last @ wp + bp

    # Fold (adj + adj^T)/2 into the projection columns.
    din = wp_f.shape[0]
    wp_t = wp_f.reshape(din, n_nodes, n_nodes).transpose(0, 2, 1).reshape(din, -1)
    bp_t = bp_f.reshape(1, n_nodes, n_nodes).transpose(0, 2, 1).reshape(1, -1)
    wp_sym = 0.5 * (wp_f + wp_t)
    bp_sym = 0.5 * (bp_f + bp_t)

    all_ws = ws + [wp_sym]
    all_bs = bs + [bp_sym]
    douts = [w.shape[1] for w in all_ws]       # real output widths per layer

    latent_pad = _round_up(latent_dim, LANE)
    lane_w = max([latent_pad] + [_round_up(d, LANE) for d in douts])
    din_pads = [latent_pad] + [_round_up(d, LANE) for d in douts[:-1]]

    segments, meta, off = [], [], 0
    for w, b, din_pad in zip(all_ws, all_bs, din_pads):
        w_pad = jnp.zeros((din_pad, lane_w), jnp.float32)
        w_pad = w_pad.at[:w.shape[0], :w.shape[1]].set(w)
        b_pad = jnp.zeros((SUB, lane_w), jnp.float32)
        b_pad = b_pad.at[:1, :b.shape[1]].set(b)
        segments += [w_pad, b_pad]
        meta.append((off, din_pad, off + din_pad))   # (w_off, rows, b_off)
        off += din_pad + SUB
    packed = jnp.concatenate(segments, axis=0)
    return packed, tuple(meta), tuple(douts), lane_w, latent_pad


# ---------------------------------------------------------------------------
# Pure-JAX reference (unfolded, unpadded params) for correctness checking
# ---------------------------------------------------------------------------
def decoder_ref(x, params, n_nodes):
    h = x
    for (w, b, g, be) in params["fc"]:
        h = jnp.maximum(h @ w + b, 0.0)
        mean = h.mean(-1, keepdims=True)
        var = ((h - mean) ** 2).mean(-1, keepdims=True)
        h = (h - mean) / jnp.sqrt(var + LN_EPS) * g + be
    wp, bp = params["proj"]
    y = h @ wp + bp
    adj = y.reshape(x.shape[0], n_nodes, n_nodes)
    return (adj + jnp.swapaxes(adj, 1, 2)) / 2


# ---------------------------------------------------------------------------
if __name__ == "__main__":
    B = 2
    latent_dim = 32
    hidden_dim = 16
    n_layers = 3
    n_nodes = 8

    key = jax.random.PRNGKey(0)
    key_x, key_p = jax.random.split(key)
    x = jax.random.normal(key_x, (B, latent_dim), jnp.float32)
    params = init_params(key_p, latent_dim, hidden_dim, n_layers, n_nodes)
    packed, meta, douts, lane_w, latent_pad = fold_and_pack_params(
        params, latent_dim, n_nodes)

    fwd = jax.jit(functools.partial(
        decoder_forward, meta=meta, douts=douts, lane_w=lane_w,
        latent_pad=latent_pad, n_nodes=n_nodes))
    adj = fwd(x, packed)
    jax.block_until_ready(adj)

    assert adj.shape == (B, n_nodes, n_nodes)
    # Symmetry by construction (folded, symmetrized projection weights).
    assert bool(jnp.allclose(adj, jnp.swapaxes(adj, 1, 2), atol=1e-5))
    # Numerical parity with the unfused, unfolded, unpadded reference.
    ref = decoder_ref(x, params, n_nodes)
    assert bool(jnp.allclose(adj, ref, atol=1e-4, rtol=1e-4))
    print("KERNEL_OK")
</pallas_src>

<mosaic_0001>
module attributes {stable_mosaic.version = 11 : i64} {
  func.func @kernel(%arg0: memref<8x128xf32, #tpu.memory_space<vmem>>, %arg1: memref<544x128xf32, #tpu.memory_space<vmem>>, %arg2: memref<8x128xf32, #tpu.memory_space<vmem>>) attributes {dimension_semantics = [], scalar_prefetch = 0 : i64, scratch_operands = 0 : i64, tpu.core_type = #tpu.core_type<tc>} {
    %c0 = arith.constant 0 : index
    %c0_0 = arith.constant 0 : index
    %0 = vector.load %arg0[%c0, %c0_0] : memref<8x128xf32, #tpu.memory_space<vmem>>, vector<8x128xf32>
    %c0_1 = arith.constant 0 : index
    %c0_2 = arith.constant 0 : index
    %1 = vector.load %arg1[%c0_1, %c0_2] : memref<544x128xf32, #tpu.memory_space<vmem>>, vector<128x128xf32>
    %c128 = arith.constant 128 : index
    %c0_3 = arith.constant 0 : index
    %2 = vector.load %arg1[%c128, %c0_3] : memref<544x128xf32, #tpu.memory_space<vmem>>, vector<1x128xf32>
    %cst = arith.constant dense<0.000000e+00> : vector<8x128xf32>
    %3 = tpu.matmul %0, %1, %cst {dimension_numbers = #tpu.dot_dimension_numbers<[1], [0], [0], [1], [0, 0, 1, 1], [], []>} : vector<8x128xf32>, vector<128x128xf32>, vector<8x128xf32> -> vector<8x128xf32>
    %4 = vector.broadcast %2 : vector<1x128xf32> to vector<8x128xf32>
    %5 = arith.addf %3, %4 : vector<8x128xf32>
    %cst_4 = arith.constant 0.000000e+00 : f32
    %6 = vector.broadcast %cst_4 : f32 to vector<8x128xf32>
    %7 = arith.maximumf %5, %6 : vector<8x128xf32>
    %cst_5 = arith.constant dense<0.000000e+00> : vector<8xf32>
    %8 = vector.multi_reduction <add>, %7, %cst_5 [1] : vector<8x128xf32> to vector<8xf32>
    %9 = vector.shape_cast %8 : vector<8xf32> to vector<8x1xf32>
    %cst_6 = arith.constant 6.250000e-02 : f32
    %10 = vector.broadcast %cst_6 : f32 to vector<8x1xf32>
    %11 = arith.mulf %9, %10 : vector<8x1xf32>
    %12 = arith.mulf %7, %7 : vector<8x128xf32>
    %cst_7 = arith.constant dense<0.000000e+00> : vector<8xf32>
    %13 = vector.multi_reduction <add>, %12, %cst_7 [1] : vector<8x128xf32> to vector<8xf32>
    %14 = vector.shape_cast %13 : vector<8xf32> to vector<8x1xf32>
    %cst_8 = arith.constant 6.250000e-02 : f32
    %15 = vector.broadcast %cst_8 : f32 to vector<8x1xf32>
    %16 = arith.mulf %14, %15 : vector<8x1xf32>
    %17 = arith.mulf %11, %11 : vector<8x1xf32>
    %18 = arith.subf %16, %17 : vector<8x1xf32>
    %cst_9 = arith.constant 0.000000e+00 : f32
    %19 = vector.broadcast %cst_9 : f32 to vector<8x1xf32>
    %20 = arith.maximumf %18, %19 : vector<8x1xf32>
    %21 = vector.broadcast %11 : vector<8x1xf32> to vector<8x128xf32>
    %22 = arith.subf %7, %21 : vector<8x128xf32>
    %cst_10 = arith.constant 9.99999974E-6 : f32
    %23 = vector.broadcast %cst_10 : f32 to vector<8x1xf32>
    %24 = arith.addf %20, %23 : vector<8x1xf32>
    %25 = math.rsqrt %24 : vector<8x1xf32>
    %26 = vector.broadcast %25 : vector<8x1xf32> to vector<8x128xf32>
    %27 = arith.mulf %22, %26 : vector<8x128xf32>
    %c136 = arith.constant 136 : index
    %c0_11 = arith.constant 0 : index
    %28 = vector.load %arg1[%c136, %c0_11] : memref<544x128xf32, #tpu.memory_space<vmem>>, vector<128x128xf32>
    %c264 = arith.constant 264 : index
    %c0_12 = arith.constant 0 : index
    %29 = vector.load %arg1[%c264, %c0_12] : memref<544x128xf32, #tpu.memory_space<vmem>>, vector<1x128xf32>
    %cst_13 = arith.constant dense<0.000000e+00> : vector<8x128xf32>
    %30 = tpu.matmul %27, %28, %cst_13 {dimension_numbers = #tpu.dot_dimension_numbers<[1], [0], [0], [1], [0, 0, 1, 1], [], []>} : vector<8x128xf32>, vector<128x128xf32>, vector<8x128xf32> -> vector<8x128xf32>
    %31 = vector.broadcast %29 : vector<1x128xf32> to vector<8x128xf32>
    %32 = arith.addf %30, %31 : vector<8x128xf32>
    %cst_14 = arith.constant 0.000000e+00 : f32
    %33 = vector.broadcast %cst_14 : f32 to vector<8x128xf32>
    %34 = arith.maximumf %32, %33 : vector<8x128xf32>
    %cst_15 = arith.constant dense<0.000000e+00> : vector<8xf32>
    %35 = vector.multi_reduction <add>, %34, %cst_15 [1] : vector<8x128xf32> to vector<8xf32>
    %36 = vector.shape_cast %35 : vector<8xf32> to vector<8x1xf32>
    %cst_16 = arith.constant 3.125000e-02 : f32
    %37 = vector.broadcast %cst_16 : f32 to vector<8x1xf32>
    %38 = arith.mulf %36, %37 : vector<8x1xf32>
    %39 = arith.mulf %34, %34 : vector<8x128xf32>
    %cst_17 = arith.constant dense<0.000000e+00> : vector<8xf32>
    %40 = vector.multi_reduction <add>, %39, %cst_17 [1] : vector<8x128xf32> to vector<8xf32>
    %41 = vector.shape_cast %40 : vector<8xf32> to vector<8x1xf32>
    %cst_18 = arith.constant 3.125000e-02 : f32
    %42 = vector.broadcast %cst_18 : f32 to vector<8x1xf32>
    %43 = arith.mulf %41, %42 : vector<8x1xf32>
    %44 = arith.mulf %38, %38 : vector<8x1xf32>
    %45 = arith.subf %43, %44 : vector<8x1xf32>
    %cst_19 = arith.constant 0.000000e+00 : f32
    %46 = vector.broadcast %cst_19 : f32 to vector<8x1xf32>
    %47 = arith.maximumf %45, %46 : vector<8x1xf32>
    %48 = vector.broadcast %38 : vector<8x1xf32> to vector<8x128xf32>
    %49 = arith.subf %34, %48 : vector<8x128xf32>
    %cst_20 = arith.constant 9.99999974E-6 : f32
    %50 = vector.broadcast %cst_20 : f32 to vector<8x1xf32>
    %51 = arith.addf %47, %50 : vector<8x1xf32>
    %52 = math.rsqrt %51 : vector<8x1xf32>
    %53 = vector.broadcast %52 : vector<8x1xf32> to vector<8x128xf32>
    %54 = arith.mulf %49, %53 : vector<8x128xf32>
    %c272 = arith.constant 272 : index
    %c0_21 = arith.constant 0 : index
    %55 = vector.load %arg1[%c272, %c0_21] : memref<544x128xf32, #tpu.memory_space<vmem>>, vector<128x128xf32>
    %c400 = arith.constant 400 : index
    %c0_22 = arith.constant 0 : index
    %56 = vector.load %arg1[%c400, %c0_22] : memref<544x128xf32, #tpu.memory_space<vmem>>, vector<1x128xf32>
    %cst_23 = arith.constant dense<0.000000e+00> : vector<8x128xf32>
    %57 = tpu.matmul %54, %55, %cst_23 {dimension_numbers = #tpu.dot_dimension_numbers<[1], [0], [0], [1], [0, 0, 1, 1], [], []>} : vector<8x128xf32>, vector<128x128xf32>, vector<8x128xf32> -> vector<8x128xf32>
    %58 = vector.broadcast %56 : vector<1x128xf32> to vector<8x128xf32>
    %59 = arith.addf %57, %58 : vector<8x128xf32>
    %cst_24 = arith.constant 0.000000e+00 : f32
    %60 = vector.broadcast %cst_24 : f32 to vector<8x128xf32>
    %61 = arith.maximumf %59, %60 : vector<8x128xf32>
    %cst_25 = arith.constant dense<0.000000e+00> : vector<8xf32>
    %62 = vector.multi_reduction <add>, %61, %cst_25 [1] : vector<8x128xf32> to vector<8xf32>
    %63 = vector.shape_cast %62 : vector<8xf32> to vector<8x1xf32>
    %cst_26 = arith.constant 0.020833334 : f32
    %64 = vector.broadcast %cst_26 : f32 to vector<8x1xf32>
    %65 = arith.mulf %63, %64 : vector<8x1xf32>
    %66 = arith.mulf %61, %61 : vector<8x128xf32>
    %cst_27 = arith.constant dense<0.000000e+00> : vector<8xf32>
    %67 = vector.multi_reduction <add>, %66, %cst_27 [1] : vector<8x128xf32> to vector<8xf32>
    %68 = vector.shape_cast %67 : vector<8xf32> to vector<8x1xf32>
    %cst_28 = arith.constant 0.020833334 : f32
    %69 = vector.broadcast %cst_28 : f32 to vector<8x1xf32>
    %70 = arith.mulf %68, %69 : vector<8x1xf32>
    %71 = arith.mulf %65, %65 : vector<8x1xf32>
    %72 = arith.subf %70, %71 : vector<8x1xf32>
    %cst_29 = arith.constant 0.000000e+00 : f32
    %73 = vector.broadcast %cst_29 : f32 to vector<8x1xf32>
    %74 = arith.maximumf %72, %73 : vector<8x1xf32>
    %75 = vector.broadcast %65 : vector<8x1xf32> to vector<8x128xf32>
    %76 = arith.subf %61, %75 : vector<8x128xf32>
    %cst_30 = arith.constant 9.99999974E-6 : f32
    %77 = vector.broadcast %cst_30 : f32 to vector<8x1xf32>
    %78 = arith.addf %74, %77 : vector<8x1xf32>
    %79 = math.rsqrt %78 : vector<8x1xf32>
    %80 = vector.broadcast %79 : vector<8x1xf32> to vector<8x128xf32>
    %81 = arith.mulf %76, %80 : vector<8x128xf32>
    %c408 = arith.constant 408 : index
    %c0_31 = arith.constant 0 : index
    %82 = vector.load %arg1[%c408, %c0_31] : memref<544x128xf32, #tpu.memory_space<vmem>>, vector<128x128xf32>
    %c536 = arith.constant 536 : index
    %c0_32 = arith.constant 0 : index
    %83 = vector.load %arg1[%c536, %c0_32] : memref<544x128xf32, #tpu.memory_space<vmem>>, vector<1x128xf32>
    %cst_33 = arith.constant dense<0.000000e+00> : vector<8x128xf32>
    %84 = tpu.matmul %81, %82, %cst_33 {dimension_numbers = #tpu.dot_dimension_numbers<[1], [0], [0], [1], [0, 0, 1, 1], [], []>} : vector<8x128xf32>, vector<128x128xf32>, vector<8x128xf32> -> vector<8x128xf32>
    %85 = vector.broadcast %83 : vector<1x128xf32> to vector<8x128xf32>
    %86 = arith.addf %84, %85 : vector<8x128xf32>
    %c0_34 = arith.constant 0 : index
    %c0_35 = arith.constant 0 : index
    %87 = vector.load %arg2[%c0_34, %c0_35] : memref<8x128xf32, #tpu.memory_space<vmem>>, vector<8x128xf32>
    tpu.vector_store %arg2[%c0_34, %c0_35], %86 {strides = array<i32>} : memref<8x128xf32, #tpu.memory_space<vmem>>, vector<8x128xf32>,
    return
  }
}

</mosaic_0001>

<bundles_post_ra>
// kernel: decoder_forward.1
= control target key start
LH: loop header
LB: loop body
LE: loop exit
PB: predicated region body
PF: predicated region fallthrough
CT: control target
= control target key end

     0   :  { %7 = vsyncpa [#allocation3], 0  ;;  %s785_s9 = smov [#allocation2]   ;;  %s864_s0 = inlined_call_operand.vmem [shape: f32[8,128], index: 0, kind: input, shape index: {}]   ;;  %s865_s1 = inlined_call_operand.hbm [shape: f32[544,128], index: 1, kind: input, shape index: {}]   ;;  %s866_s2 = inlined_call_operand.vmem [shape: f32[8,128], index: 2, kind: output, shape index: {}]  }
   0x1   :  { %s15_s10 = sshll.u32 %s785_s9, 4  ;;  %s761_s13 = scalar_lea.hbm %s865_s1, 8704  ;;  %s16_s10 = int_to_ptr.vmem [resolvable:$true] %s15_s10 }
   0x2   :  { %p762_p0 = scmp.ne.s32.totalorder %s865_s1, %s761_s13  ;;  %p765_p1 = scmp.lt.u32.totalorder %s761_s13, %s865_s1 }
   0x4   :  { %p767_p2 = pnand %p765_p1, %p762_p0 }
   0x6   :  { %770 = shalt.err (!%p767_p2)
}
   0x7   :  { %s771_s18 = scalar_lea.vmem %s16_s10, 8704  ;;  %p776_p4 = scmp.lt.s32.totalorder %s16_s10, %s16_s10 }
   0x8   :  { %p772_p3 = scmp.ne.s32.totalorder %s16_s10, %s771_s18  ;;  %p777_p5 = scmp.lt.s32.totalorder %s771_s18, %s771_s18 }
   0xa   :  { %p778_p6 = por %p777_p5, %p776_p4 }
   0xc   :  { %p779_p7 = pnand %p778_p6, %p772_p3 }
   0xe   :  { %782 = shalt.err (!%p779_p7)
}
   0xf   :  { %s786_s19 = smov 128   ;;  %s787_s20 = smov 8  }
  0x10   :  { %21 = dma.hbm_to_vmem [thread:$0]  %s865_s1, 8704, %s16_s10, [#allocation3], %s786_s19, %s786_s19, %s787_s20  }
  0x11   :  { %783 = dma.done.wait [#allocation3], 8704  }
  0x12   :  { %784 = vsyncadd [#allocation3], 4294958592  ;;  %v788_v0 = vmov 0.0|0.0   ;;  %vm789_vm0 = vmmov 0   ;;  %v790_v1 = vmov 0.0   ;;  %v26_v2 = vld [vmem:[#allocation2] sm:$0xff] }
  0x13   :  { %653 = vmatprep.subr.bf16.mxu0 %v788_v0  ;;  %545 = vmatprep.mubr.msk.f32.mxu0 %vm789_vm0, %v790_v1  ;;  %v27_v3 = vld [vmem:[#allocation2 + $0x8] sm:$0xff]  ;;  %v28_v4 = vld [vmem:[#allocation2 + $0x10] sm:$0xff]  ;;  %v29_v6 = vld [vmem:[#allocation2 + $0x18] sm:$0xff] }
  0x14   :  { %677 = vmatprep.subr.bf16.mxu1 %v788_v0  ;;  %580 = vmatprep.mubr.msk.f32.mxu1 %vm789_vm0, %v790_v1  ;;  %v654_v5 = vpack.c.bf16 %v27_v3, %v26_v2  ;;  %v657_v7 = vpack.c.bf16 %v29_v6, %v28_v4  ;;  %v30_v8 = vld [vmem:[#allocation2 + $0x20] sm:$0xff]  ;;  %v31_v9 = vld [vmem:[#allocation2 + $0x28] sm:$0xff]  ;;  %v32_v11 = vld [vmem:[#allocation2 + $0x30] sm:$0xff] }
  0x15   :  { %v660_v10 = vpack.c.bf16 %v31_v9, %v30_v8  ;;  %v33_v12 = vld [vmem:[#allocation2 + $0x38] sm:$0xff]  ;;  %v34_v14 = vld [vmem:[#allocation2 + $0x40] sm:$0xff]  ;;  %v35_v15 = vld [vmem:[#allocation2 + $0x48] sm:$0xff] }
  0x16   :  { %655 = vmatpush3.bf16.msra.mxu0 %v654_v5  ;;  %v663_v13 = vpack.c.bf16 %v33_v12, %v32_v11  ;;  %v666_v16 = vpack.c.bf16 %v35_v15, %v34_v14  ;;  %v36_v17 = vld [vmem:[#allocation2 + $0x50] sm:$0xff]  ;;  %v37_v18 = vld [vmem:[#allocation2 + $0x58] sm:$0xff]  ;;  %v38_v20 = vld [vmem:[#allocation2 + $0x60] sm:$0xff] }
  0x17   :  { %656 = vmatprep.subr.bf16.mxu0 %v788_v0  ;;  %v669_v19 = vpack.c.bf16 %v37_v18, %v36_v17  ;;  %v39_v21 = vld [vmem:[#allocation2 + $0x68] sm:$0xff]  ;;  %v40_v23 = vld [vmem:[#allocation2 + $0x70] sm:$0xff]  ;;  %v41_v24 = vld [vmem:[#allocation2 + $0x78] sm:$0xff] }
  0x18   :  { %v672_v22 = vpack.c.bf16 %v39_v21, %v38_v20  ;;  %v675_v25 = vpack.c.bf16 %v41_v24, %v40_v23  ;;  %v25_v26 = vld [vmem:[%s864_s0] sm:$0xff]  ;;  %v132_v27 = vld [vmem:[#allocation2 + $0x88] sm:$0xff]  ;;  %v133_v28 = vld [vmem:[#allocation2 + $0x90] sm:$0xff] }
  0x19   :  { %v134_v29 = vld [vmem:[#allocation2 + $0x98] sm:$0xff]  ;;  %v678_v30 = vpack.c.bf16 %v133_v28, %v132_v27  ;;  %v135_v31 = vld [vmem:[#allocation2 + $0xa0] sm:$0xff]  ;;  %v136_v39 = vld [vmem:[#allocation2 + $0xa8] sm:$0xff] }
  0x1a   :  { %658 = vmatpush3.bf16.msra.mxu0 %v657_v7  ;;  %v681_v32 = vpack.c.bf16 %v135_v31, %v134_v29  ;;  %v441_v33 = vld [vmem:[#allocation2 + $0x80] ss:$0 sm:$0xff]  ;;  %v137_v40 = vld [vmem:[#allocation2 + $0xb0] sm:$0xff]  ;;  %v138_v42 = vld [vmem:[#allocation2 + $0xb8] sm:$0xff] }
  0x1b   :  { %659 = vmatprep.subr.bf16.mxu0 %v788_v0  ;;  %679 = vmatpush3.bf16.msra.mxu1 %v678_v30  ;;  %v684_v41 = vpack.c.bf16 %v137_v40, %v136_v39  ;;  %v139_v43 = vld [vmem:[#allocation2 + $0xc0] sm:$0xff]  ;;  %v140_v45 = vld [vmem:[#allocation2 + $0xc8] sm:$0xff]  ;;  %v141_v46 = vld [vmem:[#allocation2 + $0xd0] sm:$0xff] }
  0x1c   :  { %680 = vmatprep.subr.bf16.mxu1 %v788_v0  ;;  %v687_v44 = vpack.c.bf16 %v139_v43, %v138_v42  ;;  %v690_v47 = vpack.c.bf16 %v141_v46, %v140_v45  ;;  %v142_v48 = vld [vmem:[#allocation2 + $0xd8] sm:$0xff]  ;;  %v143_v49 = vld [vmem:[#allocation2 + $0xe0] sm:$0xff]  ;;  %v144_v51 = vld [vmem:[#allocation2 + $0xe8] sm:$0xff] }
  0x1d   :  { %v693_v50 = vpack.c.bf16 %v143_v49, %v142_v48  ;;  %v145_v52 = vld [vmem:[#allocation2 + $0xf0] sm:$0xff]  ;;  %v146_v54 = vld [vmem:[#allocation2 + $0xf8] sm:$0xff]  ;;  %v147_v55 = vld [vmem:[#allocation2 + $0x100] sm:$0xff] }
  0x1e   :  { %661 = vmatpush3.bf16.msra.mxu0 %v660_v10  ;;  %v696_v53 = vpack.c.bf16 %v145_v52, %v144_v51  ;;  %v699_v56 = vpack.c.bf16 %v147_v55, %v146_v54  ;;  %v238_v6 = vld [vmem:[#allocation2 + $0x110] sm:$0xff]  ;;  %v239_v7 = vld [vmem:[#allocation2 + $0x118] sm:$0xff]  ;;  %v240_v8 = vld [vmem:[#allocation2 + $0x120] sm:$0xff] }
  0x1f   :  { %662 = vmatprep.subr.bf16.mxu0 %v788_v0  ;;  %682 = vmatpush3.bf16.msra.mxu1 %v681_v32  ;;  %v702_v9 = vpack.c.bf16 %v239_v7, %v238_v6  ;;  %v241_v10 = vld [vmem:[#allocation2 + $0x128] sm:$0xff]  ;;  %v243_v18 = vld [vmem:[#allocation2 + $0x138] sm:$0xff]  ;;  %v244_v20 = vld [vmem:[#allocation2 + $0x140] sm:$0xff] }
  0x20   :  { %683 = vmatprep.subr.bf16.mxu1 %v788_v0  ;;  %v705_v11 = vpack.c.bf16 %v241_v10, %v240_v8  ;;  %v442_v12 = vld [vmem:[#allocation2 + $0x108] ss:$0 sm:$0xff]  ;;  %v246_v23 = vld [vmem:[#allocation2 + $0x150] sm:$0xff]  ;;  %v247_v24 = vld [vmem:[#allocation2 + $0x158] sm:$0xff] }
  0x21   :  { %v245_v21 = vld [vmem:[#allocation2 + $0x148] sm:$0xff]  ;;  %v250_v29 = vld [vmem:[#allocation2 + $0x170] sm:$0xff]  ;;  %v251_v30 = vld [vmem:[#allocation2 + $0x178] sm:$0xff] }
  0x22   :  { %664 = vmatpush3.bf16.msra.mxu0 %v663_v13  ;;  %v249_v27 = vld [vmem:[#allocation2 + $0x168] sm:$0xff]  ;;  %v720_v31 = vpack.c.bf16 %v251_v30, %v250_v29  ;;  %v252_v32 = vld [vmem:[#allocation2 + $0x180] sm:$0xff]  ;;  %v344_v46 = vld [vmem:[#allocation2 + $0x198] sm:$0xff] }
  0x23   :  { %665 = vmatprep.subr.bf16.mxu0 %v788_v0  ;;  %685 = vmatpush3.bf16.msra.mxu1 %v684_v41  ;;  %v346_v48 = vld [vmem:[#allocation2 + $0x1a8] sm:$0xff]  ;;  %v443_v52 = vld [vmem:[#allocation2 + $0x190] ss:$0 sm:$0xff]  ;;  %v356_v8 = vld [vmem:[#allocation2 + $0x1f8] sm:$0xff] }
  0x24   :  { %686 = vmatprep.subr.bf16.mxu1 %v788_v0  ;;  %v355_v6 = vld [vmem:[#allocation2 + $0x1f0] sm:$0xff] }
  0x26   :  { %667 = vmatpush3.bf16.msra.mxu0 %v666_v16 }
  0x27   :  { %668 = vmatprep.subr.bf16.mxu0 %v788_v0  ;;  %688 = vmatpush3.bf16.msra.mxu1 %v687_v44 }
  0x28   :  { %689 = vmatprep.subr.bf16.mxu1 %v788_v0 }
  0x2a   :  { %670 = vmatpush3.bf16.msra.mxu0 %v669_v19 }
  0x2b   :  { %671 = vmatprep.subr.bf16.mxu0 %v788_v0  ;;  %691 = vmatpush3.bf16.msra.mxu1 %v690_v47  ;;  %v345_v47 = vld [vmem:[#allocation2 + $0x1a0] sm:$0xff] }
  0x2c   :  { %692 = vmatprep.subr.bf16.mxu1 %v788_v0  ;;  %v726_v49 = vpack.c.bf16 %v345_v47, %v344_v46 }
  0x2e   :  { %673 = vmatpush3.bf16.msra.mxu0 %v672_v22  ;;  %v711_v22 = vpack.c.bf16 %v245_v21, %v244_v20 }
  0x2f   :  { %674 = vmatprep.subr.bf16.mxu0 %v788_v0  ;;  %694 = vmatpush3.bf16.msra.mxu1 %v693_v50  ;;  %v347_v50 = vld [vmem:[#allocation2 + $0x1b0] sm:$0xff] }
  0x30   :  { %695 = vmatprep.subr.bf16.mxu1 %v788_v0  ;;  %v729_v51 = vpack.c.bf16 %v347_v50, %v346_v48 }
  0x32   :  { %676 = vmatpush3.bf16.msra.mxu0 %v675_v25  ;;  %v714_v25 = vpack.c.bf16 %v247_v24, %v246_v23  ;;  %v444_v24 = vld [vmem:[#allocation2 + $0x218] ss:$0 sm:$0xff] }
  0x33   :  { %701 = vmatprep.subr.bf16.mxu0 %v788_v0  ;;  %697 = vmatpush3.bf16.msra.mxu1 %v696_v53 }
  0x34   :  { %698 = vmatprep.subr.bf16.mxu1 %v788_v0 }
  0x35   :  { %546 = vmatmul.mubr.f32.vlgmr.msra.gmra.mrb[0].mxu0 %v25_v26  ;;  %v248_v26 = vld [vmem:[#allocation2 + $0x160] sm:$0xff] }
  0x36   :  { %615 = vmatprep.mubr.msk.f32.mxu0 %vm789_vm0, %v790_v1  ;;  %703 = vmatpush3.bf16.msra.mxu0 %v702_v9  ;;  %v717_v28 = vpack.c.bf16 %v249_v27, %v248_v26  ;;  %v357_v9 = vld [vmem:[#allocation2 + $0x200] sm:$0xff] }
  0x37   :  { %700 = vmatpush3.bf16.msra.mxu1 %v699_v56  ;;  %704 = vmatprep.subr.bf16.mxu0 %v788_v0  ;;  %v744_v10 = vpack.c.bf16 %v357_v9, %v356_v8 }
  0x38   :  { %725 = vmatprep.subr.bf16.mxu1 %v788_v0 }
  0x3a   :  { %706 = vmatpush3.bf16.msra.mxu0 %v705_v11  ;;  %v358_v11 = vld [vmem:[#allocation2 + $0x208] sm:$0xff] }
  0x3b   :  { %707 = vmatprep.subr.bf16.mxu0 %v788_v0 }
 0x108   :  { %v113_v34 = vpop.f32.mrb[0].mxu0 }
 0x109   :  { %v114_v35 = vadd.f32 %v441_v33, %v113_v34  ;;  %v547_v36 = vpop.f32.mrb[1].mxu0  ;;  %v253_v33 = vld [vmem:[#allocation2 + $0x188] sm:$0xff] }
 0x10a   :  { %v723_v34 = vpack.c.bf16 %v253_v33, %v252_v32 }
 0x10b   :  { %v117_v37 = vmax.f32 %v114_v35, 0.0 }
 0x10d   :  { %118 = vadd.xlane.f32.xlu0 %v117_v37  ;;  %v121_v38 = vmul.f32 %v117_v37, %v117_v37 }
 0x111   :  { %122 = vadd.xlane.f32.xlu0 %v121_v38 }
 0x19a   :  { %v119_v57 = vpop.xlane.xlu0 %118 }
 0x19b   :  { %v120_v58 = vmul.f32 0.0625, %v119_v57 }
 0x19d   :  { %v125_v60 = vmul.f32 %v120_v58, %v120_v58  ;;  %v128_v3 = vsub.f32 %v117_v37, %v120_v58  ;;  %v348_v58 = vld [vmem:[#allocation2 + $0x1b8] sm:$0xff] }
 0x19e   :  { %v123_v59 = vpop.xlane.xlu0 %122 }
 0x19f   :  { %v124_v61 = vmul.f32 0.0625, %v123_v59  ;;  %v349_v59 = vld [vmem:[#allocation2 + $0x1c0] sm:$0xff] }
 0x1a1   :  { %v126_v62 = vsub.f32 %v124_v61, %v125_v60  ;;  %v732_v60 = vpack.c.bf16 %v349_v59, %v348_v58  ;;  %v350_v61 = vld [vmem:[#allocation2 + $0x1c8] sm:$0xff] }
 0x1a3   :  { %v127_v63 = vmax.f32 %v126_v62, 0.0  ;;  %v351_v62 = vld [vmem:[#allocation2 + $0x1d0] sm:$0xff] }
 0x1a5   :  { %v129_v2 = vadd.f32 1e-05, %v127_v63  ;;  %v735_v63 = vpack.c.bf16 %v351_v62, %v350_v61 }
 0x1a7   :  { %755 = vrsqrt.f32 %v129_v2  ;;  %v352_v2 = vld [vmem:[#allocation2 + $0x1d8] sm:$0xff] }
 0x1b1   :  { %v756_v4 = vpop.eup %755 }
 0x1b2   :  { %v131_v5 = vmul.f32 %v756_v4, %v128_v3  ;;  %v353_v3 = vld [vmem:[#allocation2 + $0x1e0] sm:$0xff] }
 0x1b3   :  { %v738_v4 = vpack.c.bf16 %v353_v3, %v352_v2 }
 0x1b4   :  { %581 = vmatmul.mubr.f32.vlgmr.msra.gmra.mrb[0].mxu1 %v131_v5  ;;  %v354_v5 = vld [vmem:[#allocation2 + $0x1e8] sm:$0xff] }
 0x1b5   :  { %650 = vmatprep.mubr.msk.f32.mxu1 %vm789_vm0, %v790_v1  ;;  %v242_v1 = vld [vmem:[#allocation2 + $0x130] sm:$0xff]  ;;  %727 = vmatpush3.bf16.msra.mxu1 %v726_v49  ;;  %v741_v7 = vpack.c.bf16 %v355_v6, %v354_v5 }
 0x1b6   :  { %v708_v19 = vpack.c.bf16 %v243_v18, %v242_v1  ;;  %728 = vmatprep.subr.bf16.mxu1 %v788_v0 }
 0x1b8   :  { %709 = vmatpush3.bf16.msra.mxu0 %v708_v19 }
 0x1b9   :  { %710 = vmatprep.subr.bf16.mxu0 %v788_v0  ;;  %730 = vmatpush3.bf16.msra.mxu1 %v729_v51 }
 0x1ba   :  { %731 = vmatprep.subr.bf16.mxu1 %v788_v0 }
 0x1bc   :  { %712 = vmatpush3.bf16.msra.mxu0 %v711_v22 }
 0x1bd   :  { %713 = vmatprep.subr.bf16.mxu0 %v788_v0  ;;  %733 = vmatpush3.bf16.msra.mxu1 %v732_v60 }
 0x1be   :  { %734 = vmatprep.subr.bf16.mxu1 %v788_v0 }
 0x1c0   :  { %715 = vmatpush3.bf16.msra.mxu0 %v714_v25 }
 0x1c1   :  { %716 = vmatprep.subr.bf16.mxu0 %v788_v0  ;;  %736 = vmatpush3.bf16.msra.mxu1 %v735_v63 }
 0x1c2   :  { %737 = vmatprep.subr.bf16.mxu1 %v788_v0 }
 0x1c4   :  { %718 = vmatpush3.bf16.msra.mxu0 %v717_v28 }
 0x1c5   :  { %719 = vmatprep.subr.bf16.mxu0 %v788_v0  ;;  %739 = vmatpush3.bf16.msra.mxu1 %v738_v4 }
 0x1c6   :  { %740 = vmatprep.subr.bf16.mxu1 %v788_v0 }
 0x1c8   :  { %721 = vmatpush3.bf16.msra.mxu0 %v720_v31 }
 0x1c9   :  { %722 = vmatprep.subr.bf16.mxu0 %v788_v0  ;;  %742 = vmatpush3.bf16.msra.mxu1 %v741_v7 }
 0x1ca   :  { %743 = vmatprep.subr.bf16.mxu1 %v788_v0 }
 0x1cc   :  { %724 = vmatpush3.bf16.msra.mxu0 %v723_v34 }
 0x1cd   :  { %745 = vmatpush3.bf16.msra.mxu1 %v744_v10 }
 0x1ce   :  { %746 = vmatprep.subr.bf16.mxu1 %v788_v0 }
 0x287   :  { %v219_v13 = vpop.f32.mrb[0].mxu1 }
 0x288   :  { %v220_v14 = vadd.f32 %v442_v12, %v219_v13  ;;  %v582_v15 = vpop.f32.mrb[1].mxu1  ;;  %v359_v12 = vld [vmem:[#allocation2 + $0x210] sm:$0xff] }
 0x289   :  { %v747_v13 = vpack.c.bf16 %v359_v12, %v358_v11 }
 0x28a   :  { %v223_v16 = vmax.f32 %v220_v14, 0.0 }
 0x28b   :  { %748 = vmatpush3.bf16.msra.mxu1 %v747_v13 }
 0x28c   :  { %224 = vadd.xlane.f32.xlu1 %v223_v16  ;;  %v227_v17 = vmul.f32 %v223_v16, %v223_v16 }
 0x290   :  { %228 = vadd.xlane.f32.xlu1 %v227_v17 }
 0x319   :  { %v225_v35 = vpop.xlane.xlu1 %224 }
 0x31a   :  { %v226_v36 = vmul.f32 0.03125, %v225_v35 }
 0x31c   :  { %v231_v38 = vmul.f32 %v226_v36, %v226_v36  ;;  %v234_v43 = vsub.f32 %v223_v16, %v226_v36 }
 0x31d   :  { %v229_v37 = vpop.xlane.xlu1 %228 }
 0x31e   :  { %v230_v39 = vmul.f32 0.03125, %v229_v37 }
 0x320   :  { %v232_v40 = vsub.f32 %v230_v39, %v231_v38 }
 0x322   :  { %v233_v41 = vmax.f32 %v232_v40, 0.0 }
 0x324   :  { %v235_v42 = vadd.f32 1e-05, %v233_v41 }
 0x326   :  { %757 = vrsqrt.f32 %v235_v42 }
 0x330   :  { %v758_v44 = vpop.eup %757 }
 0x331   :  { %v237_v45 = vmul.f32 %v758_v44, %v234_v43 }
 0x333   :  { %616 = vmatmul.mubr.f32.vlgmr.msra.gmra.mrb[2].mxu0 %v237_v45 }
 0x406   :  { %v325_v53 = vpop.f32.mrb[2].mxu0 }
 0x407   :  { %v326_v54 = vadd.f32 %v443_v52, %v325_v53  ;;  %v617_v55 = vpop.f32.mrb[3].mxu0 }
 0x409   :  { %v329_v56 = vmax.f32 %v326_v54, 0.0 }
 0x40b   :  { %330 = vadd.xlane.f32.xlu0 %v329_v56  ;;  %v333_v57 = vmul.f32 %v329_v56, %v329_v56 }
 0x40d   :  { %334 = vadd.xlane.f32.xlu1 %v333_v57 }
 0x498   :  { %v331_v14 = vpop.xlane.xlu0 %330 }
 0x499   :  { %v332_v15 = vmul.f32 0.020833334, %v331_v14 }
 0x49a   :  { %v335_v16 = vpop.xlane.xlu1 %334 }
 0x49b   :  { %v337_v17 = vmul.f32 %v332_v15, %v332_v15  ;;  %v336_v1 = vmul.f32 0.020833334, %v335_v16  ;;  %v340_v21 = vsub.f32 %v329_v56, %v332_v15 }
 0x49d   :  { %v338_v18 = vsub.f32 %v336_v1, %v337_v17 }
 0x49f   :  { %v339_v19 = vmax.f32 %v338_v18, 0.0 }
 0x4a1   :  { %v341_v20 = vadd.f32 1e-05, %v339_v19 }
 0x4a3   :  { %759 = vrsqrt.f32 %v341_v20 }
 0x4ad   :  { %v760_v22 = vpop.eup %759 }
 0x4ae   :  { %v343_v23 = vmul.f32 %v760_v22, %v340_v21 }
 0x4b0   :  { %651 = vmatmul.mubr.f32.vlgmr.msra.gmra.mrb[2].mxu1 %v343_v23 }
 0x583   :  { %v431_v25 = vpop.f32.mrb[2].mxu1 }
 0x584   :  { %v432_v26 = vadd.f32 %v444_v24, %v431_v25  ;;  %v652_v27 = vpop.f32.mrb[3].mxu1 }
 0x586   :  { %435 = vst [vmem:[%s866_s2] sm:$0xff] %v432_v26 }
 0x587   :  { %440 = vsyncpa [#allocation3], 1 }

</bundles_post_ra>
